<compile_context>
chip_gen: v5e
topology: v5e:2x2
jax: 0.10.0
libtpu: 0.0.40
codegen_flags: <defaults>
</compile_context>

<pallas_src>
import functools

import jax
import jax.numpy as jnp
from jax.experimental import pallas as pl
from jax.experimental.pallas import tpu as pltpu


def _round_up(x, m):
    return ((x + m - 1) // m) * m


# --------------------------- fused Pallas kernel -----------------------------

def _fused_graphnet(a_pad, x_pad, w_stack, b_stack, p_pad, wc_pad, bc_pad,
                    *, row_tile, n_classes):
    """One pallas_call computing the whole GraphNet forward.

    a_pad   : [N_pad, N_pad]  row-normalized adjacency (zero-padded)
    x_pad   : [N_pad, F_PAD]  node features (zero-padded)
    w_stack : [L, F_PAD, F_PAD] per-layer weights (zero-padded)
    b_stack : [L, 1, F_PAD]     per-layer biases
    p_pad   : [G_PAD, N_pad]  mean-pool matrix
    wc_pad  : [F_PAD, C_PAD]  classifier weight
    bc_pad  : [1, C_PAD]      classifier bias
    returns : [G_PAD, C_PAD]  log-probabilities (padded)
    """
    n_layers = w_stack.shape[0]
    n_pad, f_pad = x_pad.shape
    g_pad = p_pad.shape[0]
    c_pad = wc_pad.shape[1]
    n_row_tiles = n_pad // row_tile

    def kernel(a_ref, x_ref, w_ref, b_ref, p_ref, wc_ref, bc_ref,
               o_ref, h_scr, pooled_scr):
        layer = pl.program_id(0)
        r = pl.program_id(1)
        last_layer = pl.num_programs(0) - 1
        last_tile = pl.num_programs(1) - 1

        # Load the (padded) input features into the ping buffer once.
        @pl.when(jnp.logical_and(layer == 0, r == 0))
        def _():
            h_scr[0] = x_ref[...]

        src = layer % 2          # read previous layer's activations
        dst = 1 - src            # write this layer's activations
        row_start = pl.multiple_of(r * row_tile, row_tile)

        # Reassociated message passing: (A_rows @ H) @ W  (MXU, f32 acc).
        ah = jnp.dot(a_ref[...], h_scr[src],
                     preferred_element_type=jnp.float32)          # [rt, F]
        z = jnp.dot(ah, w_ref[0],
                    preferred_element_type=jnp.float32) + b_ref[0]  # [rt, F]
        h_new = jnp.where(z > 0, z, 0.01 * z)   # LeakyReLU (torch default 0.01)
        h_scr[dst, pl.ds(row_start, row_tile), :] = h_new

        is_last = layer == last_layer

        @pl.when(jnp.logical_and(is_last, r == 0))
        def _():
            pooled_scr[...] = jnp.zeros_like(pooled_scr)

        # Accumulate the mean pooling during the last layer's row tiles.
        @pl.when(is_last)
        def _():
            pooled_scr[...] += jnp.dot(p_ref[...], h_new,
                                       preferred_element_type=jnp.float32)

        # Classifier + log_softmax, written once at the very last grid step.
        @pl.when(jnp.logical_and(is_last, r == last_tile))
        def _():
            logits = jnp.dot(pooled_scr[...], wc_ref[...],
                             preferred_element_type=jnp.float32) + bc_ref[...]
            col = jax.lax.broadcasted_iota(jnp.int32, logits.shape, 1)
            logits = jnp.where(col < n_classes, logits, -1e30)  # mask pad classes
            m = jnp.max(logits, axis=-1, keepdims=True)
            e = jnp.exp(logits - m)
            o_ref[...] = logits - m - jnp.log(jnp.sum(e, axis=-1, keepdims=True))

    return pl.pallas_call(
        kernel,
        out_shape=jax.ShapeDtypeStruct((g_pad, c_pad), jnp.float32),
        grid_spec=pltpu.PrefetchScalarGridSpec(
            num_scalar_prefetch=0,
            grid=(n_layers, n_row_tiles),          # layer outer, row tile inner
            in_specs=[
                pl.BlockSpec((row_tile, n_pad), lambda l, r: (r, 0)),   # A rows
                pl.BlockSpec((n_pad, f_pad), lambda l, r: (0, 0)),      # X (full)
                pl.BlockSpec((1, f_pad, f_pad), lambda l, r: (l, 0, 0)),  # W[l]
                pl.BlockSpec((1, 1, f_pad), lambda l, r: (l, 0, 0)),      # b[l]
                pl.BlockSpec((g_pad, row_tile), lambda l, r: (0, r)),   # P cols
                pl.BlockSpec((f_pad, c_pad), lambda l, r: (0, 0)),      # Wc
                pl.BlockSpec((1, c_pad), lambda l, r: (0, 0)),          # bc
            ],
            out_specs=pl.BlockSpec((g_pad, c_pad), lambda l, r: (0, 0)),
            scratch_shapes=[
                pltpu.VMEM((2, n_pad, f_pad), jnp.float32),   # H ping-pong
                pltpu.VMEM((g_pad, f_pad), jnp.float32),      # pooled accum
            ],
        ),
        # Layer ping-pong + resident accumulators require sequential order.
        compiler_params=pltpu.CompilerParams(
            dimension_semantics=("arbitrary", "arbitrary")),
    )(a_pad, x_pad, w_stack, b_stack, p_pad, wc_pad, bc_pad)


# ------------------------------ host wrapper ---------------------------------

def graphnet_forward(x, edge_index, batch, params, *, num_graphs):
    """GraphNet-style forward. x: [N, in_features] f32, edge_index: [2, E] i32,
    batch: [N] i32 graph ids."""
    n, in_features = x.shape
    emb = params["layers"][-1][0].shape[1]
    n_classes = params["w_out"].shape[1]

    # --- glue (plain JAX): dense row-normalized adjacency with self loops ---
    # TODO(synk): for large sparse graphs replace dense A with a scalar-prefetch
    # (row offsets / column-block ids) block-sparse formulation.
    src, dst = edge_index[0], edge_index[1]
    adj = jnp.zeros((n, n), jnp.float32).at[dst, src].add(1.0)
    adj = jnp.minimum(adj, 1.0) + jnp.eye(n, dtype=jnp.float32)
    a_norm = adj / jnp.sum(adj, axis=1, keepdims=True)

    # --- glue: mean-pool matrix [num_graphs, N] ---
    onehot = (batch[None, :] == jnp.arange(num_graphs)[:, None]).astype(jnp.float32)
    p_mean = onehot / jnp.maximum(jnp.sum(onehot, axis=1, keepdims=True), 1.0)

    # --- padding to MXU/lane-friendly shapes ---
    row_tile = 256 if n >= 256 else 128
    n_pad = _round_up(n, row_tile)
    f_pad = _round_up(max(in_features, emb, 1), 128)
    c_pad = _round_up(max(n_classes, 1), 128)
    g_pad = _round_up(max(num_graphs, 1), 8)

    a_pad = jnp.zeros((n_pad, n_pad), jnp.float32).at[:n, :n].set(a_norm)
    x_pad = jnp.zeros((n_pad, f_pad), jnp.float32).at[:n, :in_features].set(x)
    p_pad = jnp.zeros((g_pad, n_pad), jnp.float32).at[:num_graphs, :n].set(p_mean)
    w_stack = jnp.stack([
        jnp.zeros((f_pad, f_pad), jnp.float32).at[:w.shape[0], :w.shape[1]].set(w)
        for (w, _) in params["layers"]])
    b_stack = jnp.stack([
        jnp.zeros((1, f_pad), jnp.float32).at[0, :b.shape[0]].set(b)
        for (_, b) in params["layers"]])
    wc_pad = jnp.zeros((f_pad, c_pad), jnp.float32).at[:emb, :n_classes].set(params["w_out"])
    bc_pad = jnp.zeros((1, c_pad), jnp.float32).at[0, :n_classes].set(params["b_out"])

    out_pad = _fused_graphnet(a_pad, x_pad, w_stack, b_stack, p_pad, wc_pad,
                              bc_pad, row_tile=row_tile, n_classes=n_classes)
    return out_pad[:num_graphs, :n_classes]


# --------------------------- deterministic init -------------------------------

def init_params(key, in_features, emb_size, n_classes, n_layers):
    layers = []
    f_in = in_features
    for _ in range(n_layers):
        key, kw, kb = jax.random.split(key, 3)
        w = jax.random.normal(kw, (f_in, emb_size), jnp.float32) * (1.0 / jnp.sqrt(f_in))
        b = jax.random.normal(kb, (emb_size,), jnp.float32) * 0.01
        layers.append((w, b))
        f_in = emb_size
    key, kw, kb = jax.random.split(key, 3)
    w_out = jax.random.normal(kw, (emb_size, n_classes), jnp.float32) * (1.0 / jnp.sqrt(emb_size))
    b_out = jax.random.normal(kb, (n_classes,), jnp.float32) * 0.01
    return {"layers": layers, "w_out": w_out, "b_out": b_out}


def _reference_forward(x, edge_index, batch, params, *, num_graphs):
    """Pure-JAX reference with the same semantics (for verification)."""
    n = x.shape[0]
    src, dst = edge_index[0], edge_index[1]
    adj = jnp.zeros((n, n), jnp.float32).at[dst, src].add(1.0)
    adj = jnp.minimum(adj, 1.0) + jnp.eye(n, dtype=jnp.float32)
    a_norm = adj / jnp.sum(adj, axis=1, keepdims=True)
    onehot = (batch[None, :] == jnp.arange(num_graphs)[:, None]).astype(jnp.float32)
    p_mean = onehot / jnp.maximum(jnp.sum(onehot, axis=1, keepdims=True), 1.0)
    h = x
    for (w, b) in params["layers"]:
        z = (a_norm @ h) @ w + b
        h = jnp.where(z > 0, z, 0.01 * z)
    logits = (p_mean @ h) @ params["w_out"] + params["b_out"]
    return jax.nn.log_softmax(logits, axis=-1)


if __name__ == "__main__":
    # small shapes: 2 graphs of 8 nodes each, in_features=8, emb=32, 4 classes
    IN_FEATURES, EMB_SIZE, N_CLASSES, N_LAYERS = 8, 32, 4, 4
    NODES_PER_GRAPH, NUM_GRAPHS = 8, 2
    N = NODES_PER_GRAPH * NUM_GRAPHS

    key = jax.random.PRNGKey(0)
    key, kx = jax.random.split(key)
    x = jax.random.normal(kx, (N, IN_FEATURES), jnp.float32)

    # ring edges within each graph (deterministic)
    src, dst = [], []
    for g in range(NUM_GRAPHS):
        base = g * NODES_PER_GRAPH
        for i in range(NODES_PER_GRAPH):
            a, b = base + i, base + (i + 1) % NODES_PER_GRAPH
            src += [a, b]
            dst += [b, a]
    edge_index = jnp.array([src, dst], dtype=jnp.int32)
    batch = jnp.repeat(jnp.arange(NUM_GRAPHS, dtype=jnp.int32), NODES_PER_GRAPH)

    params = init_params(key, IN_FEATURES, EMB_SIZE, N_CLASSES, N_LAYERS)

    out = graphnet_forward(x, edge_index, batch, params, num_graphs=NUM_GRAPHS)
    out = jax.block_until_ready(out)
    ref = jax.block_until_ready(
        _reference_forward(x, edge_index, batch, params, num_graphs=NUM_GRAPHS))

    assert out.shape == (NUM_GRAPHS, N_CLASSES)
    assert bool(jnp.all(jnp.isfinite(out)))
    assert bool(jnp.allclose(out, ref, atol=5e-2, rtol=5e-2))
    print("KERNEL_OK")
</pallas_src>

<mosaic_0001>
module attributes {stable_mosaic.version = 11 : i64} {
  func.func @kernel(%arg0: i32, %arg1: i32, %arg2: memref<128x128xf32, #tpu.memory_space<vmem>>, %arg3: memref<128x128xf32, #tpu.memory_space<vmem>>, %arg4: memref<1x128x128xf32, #tpu.memory_space<vmem>>, %arg5: memref<1x1x128xf32, #tpu.memory_space<vmem>>, %arg6: memref<8x128xf32, #tpu.memory_space<vmem>>, %arg7: memref<128x128xf32, #tpu.memory_space<vmem>>, %arg8: memref<1x128xf32, #tpu.memory_space<vmem>>, %arg9: memref<8x128xf32, #tpu.memory_space<vmem>>, %arg10: memref<2x128x128xf32, #tpu.memory_space<vmem>>, %arg11: memref<8x128xf32, #tpu.memory_space<vmem>>) attributes {dimension_semantics = [#tpu.dimension_semantics<arbitrary>, #tpu.dimension_semantics<arbitrary>], iteration_bounds = array<i64: 4, 1>, scalar_prefetch = 0 : i64, scratch_operands = 2 : i64, tpu.core_type = #tpu.core_type<tc>, window_params = [{transform_indices = @transform_0, window_bounds = array<i64: 128, 128>}, {pipeline_mode = #tpu.pipeline_mode<synchronous>, transform_indices = @transform_1, window_bounds = array<i64: 128, 128>}, {transform_indices = @transform_2, window_bounds = array<i64: 1, 128, 128>}, {transform_indices = @transform_3, window_bounds = array<i64: 1, 1, 128>}, {transform_indices = @transform_4, window_bounds = array<i64: 8, 128>}, {pipeline_mode = #tpu.pipeline_mode<synchronous>, transform_indices = @transform_5, window_bounds = array<i64: 128, 128>}, {pipeline_mode = #tpu.pipeline_mode<synchronous>, transform_indices = @transform_6, window_bounds = array<i64: 1, 128>}, {pipeline_mode = #tpu.pipeline_mode<synchronous>, transform_indices = @transform_7, window_bounds = array<i64: 8, 128>}]} {
    %c0_i32 = arith.constant 0 : i32
    %0 = arith.cmpi eq, %arg0, %c0_i32 : i32
    %c0_i32_0 = arith.constant 0 : i32
    %1 = arith.cmpi eq, %arg1, %c0_i32_0 : i32
    %2 = arith.andi %0, %1 : i1
    %3 = arith.extui %2 : i1 to i32
    %c0_i32_1 = arith.constant 0 : i32
    %4 = arith.cmpi ne, %3, %c0_i32_1 : i32
    scf.if %4 {
      %c0_25 = arith.constant 0 : index
      %c0_26 = arith.constant 0 : index
      %51 = vector.load %arg3[%c0_25, %c0_26] : memref<128x128xf32, #tpu.memory_space<vmem>>, vector<128x128xf32>
      %c0_27 = arith.constant 0 : index
      %c0_28 = arith.constant 0 : index
      %c0_29 = arith.constant 0 : index
      %52 = vector.load %arg10[%c0_27, %c0_28, %c0_29] : memref<2x128x128xf32, #tpu.memory_space<vmem>>, vector<1x128x128xf32>
      %53 = vector.shape_cast %52 : vector<1x128x128xf32> to vector<128x128xf32>
      %54 = vector.shape_cast %51 : vector<128x128xf32> to vector<1x128x128xf32>
      tpu.vector_store %arg10[%c0_27, %c0_28, %c0_29], %54 {strides = array<i32>} : memref<2x128x128xf32, #tpu.memory_space<vmem>>, vector<1x128x128xf32>,
    } else {
    }
    %c2_i32 = arith.constant 2 : i32
    %c0_i32_2 = arith.constant 0 : i32
    %5 = arith.cmpi eq, %c2_i32, %c0_i32_2 : i32
    %c1_i32 = arith.constant 1 : i32
    %6 = arith.select %5, %c1_i32, %c2_i32 : i32
    %7 = arith.remsi %arg0, %6 : i32
    %c0_i32_3 = arith.constant 0 : i32
    %8 = arith.cmpi ne, %7, %c0_i32_3 : i32
    %c0_i32_4 = arith.constant 0 : i32
    %9 = arith.cmpi slt, %7, %c0_i32_4 : i32
    %c0_i32_5 = arith.constant 0 : i32
    %10 = arith.cmpi slt, %6, %c0_i32_5 : i32
    %11 = arith.xori %9, %10 : i1
    %12 = arith.andi %11, %8 : i1
    %13 = arith.addi %7, %6 : i32
    %14 = arith.select %12, %13, %7 : i32
    %c1_i32_6 = arith.constant 1 : i32
    %15 = arith.subi %c1_i32_6, %14 : i32
    %c128_i32 = arith.constant 128 : i32
    %16 = arith.muli %arg1, %c128_i32 : i32
    %17 = tpu.assume_multiple %16, 128 : i32
    %c0 = arith.constant 0 : index
    %c0_7 = arith.constant 0 : index
    %18 = vector.load %arg2[%c0, %c0_7] : memref<128x128xf32, #tpu.memory_space<vmem>>, vector<128x128xf32>
    %19 = arith.index_cast %14 : i32 to index
    %c0_8 = arith.constant 0 : index
    %c0_9 = arith.constant 0 : index
    %20 = vector.load %arg10[%19, %c0_8, %c0_9] : memref<2x128x128xf32, #tpu.memory_space<vmem>>, vector<1x128x128xf32>
    %21 = vector.shape_cast %20 : vector<1x128x128xf32> to vector<128x128xf32>
    %cst = arith.constant dense<0.000000e+00> : vector<128x128xf32>
    %22 = tpu.matmul %18, %21, %cst {dimension_numbers = #tpu.dot_dimension_numbers<[1], [0], [0], [1], [0, 0, 1, 1], [], []>} : vector<128x128xf32>, vector<128x128xf32>, vector<128x128xf32> -> vector<128x128xf32>
    %c0_10 = arith.constant 0 : index
    %c0_11 = arith.constant 0 : index
    %c0_12 = arith.constant 0 : index
    %23 = vector.load %arg4[%c0_10, %c0_11, %c0_12] : memref<1x128x128xf32, #tpu.memory_space<vmem>>, vector<1x128x128xf32>
    %24 = vector.shape_cast %23 : vector<1x128x128xf32> to vector<128x128xf32>
    %cst_13 = arith.constant dense<0.000000e+00> : vector<128x128xf32>
    %25 = tpu.matmul %22, %24, %cst_13 {dimension_numbers = #tpu.dot_dimension_numbers<[1], [0], [0], [1], [0, 0, 1, 1], [], []>} : vector<128x128xf32>, vector<128x128xf32>, vector<128x128xf32> -> vector<128x128xf32>
    %c0_14 = arith.constant 0 : index
    %c0_15 = arith.constant 0 : index
    %c0_16 = arith.constant 0 : index
    %26 = vector.load %arg5[%c0_14, %c0_15, %c0_16] : memref<1x1x128xf32, #tpu.memory_space<vmem>>, vector<1x1x128xf32>
    %27 = vector.shape_cast %26 : vector<1x1x128xf32> to vector<1x128xf32>
    %28 = vector.broadcast %27 : vector<1x128xf32> to vector<128x128xf32>
    %29 = arith.addf %25, %28 : vector<128x128xf32>
    %cst_17 = arith.constant 0.000000e+00 : f32
    %30 = vector.broadcast %cst_17 : f32 to vector<128x128xf32>
    %31 = arith.cmpf ogt, %29, %30 : vector<128x128xf32>
    %cst_18 = arith.constant 0.00999999977 : f32
    %32 = vector.broadcast %cst_18 : f32 to vector<128x128xf32>
    %33 = arith.mulf %32, %29 : vector<128x128xf32>
    %34 = arith.select %31, %29, %33 : vector<128x128xi1>, vector<128x128xf32>
    %35 = arith.index_cast %15 : i32 to index
    %36 = arith.index_cast %17 : i32 to index
    %c0_19 = arith.constant 0 : index
    %37 = vector.load %arg10[%35, %36, %c0_19] : memref<2x128x128xf32, #tpu.memory_space<vmem>>, vector<1x128x128xf32>
    %38 = vector.shape_cast %37 : vector<1x128x128xf32> to vector<128x128xf32>
    %39 = vector.shape_cast %34 : vector<128x128xf32> to vector<1x128x128xf32>
    tpu.vector_store %arg10[%35, %36, %c0_19], %39 {strides = array<i32>} : memref<2x128x128xf32, #tpu.memory_space<vmem>>, vector<1x128x128xf32>,
    %c3_i32 = arith.constant 3 : i32
    %40 = arith.cmpi eq, %arg0, %c3_i32 : i32
    %c0_i32_20 = arith.constant 0 : i32
    %41 = arith.cmpi eq, %arg1, %c0_i32_20 : i32
    %42 = arith.andi %40, %41 : i1
    %43 = arith.extui %42 : i1 to i32
    %c0_i32_21 = arith.constant 0 : i32
    %44 = arith.cmpi ne, %43, %c0_i32_21 : i32
    scf.if %44 {
      %cst_25 = arith.constant 0.000000e+00 : f32
      %51 = vector.broadcast %cst_25 : f32 to vector<8x128xf32>
      %c0_26 = arith.constant 0 : index
      %c0_27 = arith.constant 0 : index
      %52 = vector.load %arg11[%c0_26, %c0_27] : memref<8x128xf32, #tpu.memory_space<vmem>>, vector<8x128xf32>
      tpu.vector_store %arg11[%c0_26, %c0_27], %51 {strides = array<i32>} : memref<8x128xf32, #tpu.memory_space<vmem>>, vector<8x128xf32>,
    } else {
    }
    %45 = arith.extui %40 : i1 to i32
    %c0_i32_22 = arith.constant 0 : i32
    %46 = arith.cmpi ne, %45, %c0_i32_22 : i32
    scf.if %46 {
      %c0_25 = arith.constant 0 : index
      %c0_26 = arith.constant 0 : index
      %51 = vector.load %arg11[%c0_25, %c0_26] : memref<8x128xf32, #tpu.memory_space<vmem>>, vector<8x128xf32>
      %c0_27 = arith.constant 0 : index
      %c0_28 = arith.constant 0 : index
      %52 = vector.load %arg6[%c0_27, %c0_28] : memref<8x128xf32, #tpu.memory_space<vmem>>, vector<8x128xf32>
      %cst_29 = arith.constant dense<0.000000e+00> : vector<8x128xf32>
      %53 = tpu.matmul %52, %34, %cst_29 {dimension_numbers = #tpu.dot_dimension_numbers<[1], [0], [0], [1], [0, 0, 1, 1], [], []>} : vector<8x128xf32>, vector<128x128xf32>, vector<8x128xf32> -> vector<8x128xf32>
      %54 = arith.addf %51, %53 : vector<8x128xf32>
      %c0_30 = arith.constant 0 : index
      %c0_31 = arith.constant 0 : index
      %55 = vector.load %arg11[%c0_30, %c0_31] : memref<8x128xf32, #tpu.memory_space<vmem>>, vector<8x128xf32>
      tpu.vector_store %arg11[%c0_30, %c0_31], %54 {strides = array<i32>} : memref<8x128xf32, #tpu.memory_space<vmem>>, vector<8x128xf32>,
    } else {
    }
    %c0_i32_23 = arith.constant 0 : i32
    %47 = arith.cmpi eq, %arg1, %c0_i32_23 : i32
    %48 = arith.andi %40, %47 : i1
    %49 = arith.extui %48 : i1 to i32
    %c0_i32_24 = arith.constant 0 : i32
    %50 = arith.cmpi ne, %49, %c0_i32_24 : i32
    scf.if %50 {
      %c0_25 = arith.constant 0 : index
      %c0_26 = arith.constant 0 : index
      %51 = vector.load %arg11[%c0_25, %c0_26] : memref<8x128xf32, #tpu.memory_space<vmem>>, vector<8x128xf32>
      %c0_27 = arith.constant 0 : index
      %c0_28 = arith.constant 0 : index
      %52 = vector.load %arg7[%c0_27, %c0_28] : memref<128x128xf32, #tpu.memory_space<vmem>>, vector<128x128xf32>
      %cst_29 = arith.constant dense<0.000000e+00> : vector<8x128xf32>
      %53 = tpu.matmul %51, %52, %cst_29 {dimension_numbers = #tpu.dot_dimension_numbers<[1], [0], [0], [1], [0, 0, 1, 1], [], []>} : vector<8x128xf32>, vector<128x128xf32>, vector<8x128xf32> -> vector<8x128xf32>
      %c0_30 = arith.constant 0 : index
      %c0_31 = arith.constant 0 : index
      %54 = vector.load %arg8[%c0_30, %c0_31] : memref<1x128xf32, #tpu.memory_space<vmem>>, vector<1x128xf32>
      %55 = vector.broadcast %54 : vector<1x128xf32> to vector<8x128xf32>
      %56 = arith.addf %53, %55 : vector<8x128xf32>
      %57 = tpu.iota {dimensions = array<i32: 1>} : vector<8x128xi32>
      %c4_i32 = arith.constant 4 : i32
      %58 = vector.broadcast %c4_i32 : i32 to vector<8x128xi32>
      %59 = arith.cmpi slt, %57, %58 : vector<8x128xi32>
      %cst_32 = arith.constant -1.000000e+30 : f32
      %60 = vector.broadcast %cst_32 : f32 to vector<8x128xf32>
      %61 = arith.select %59, %56, %60 : vector<8x128xi1>, vector<8x128xf32>
      %cst_33 = arith.constant dense<0xFF800000> : vector<8xf32>
      %62 = vector.multi_reduction <maximumf>, %61, %cst_33 [1] : vector<8x128xf32> to vector<8xf32>
      %63 = vector.shape_cast %62 : vector<8xf32> to vector<8x1xf32>
      %64 = vector.broadcast %63 : vector<8x1xf32> to vector<8x128xf32>
      %65 = arith.subf %61, %64 : vector<8x128xf32>
      %66 = math.exp %65 : vector<8x128xf32>
      %67 = vector.broadcast %63 : vector<8x1xf32> to vector<8x128xf32>
      %68 = arith.subf %61, %67 : vector<8x128xf32>
      %cst_34 = arith.constant dense<0.000000e+00> : vector<8xf32>
      %69 = vector.multi_reduction <add>, %66, %cst_34 [1] : vector<8x128xf32> to vector<8xf32>
      %70 = vector.shape_cast %69 : vector<8xf32> to vector<8x1xf32>
      %71 = math.log %70 : vector<8x1xf32>
      %72 = vector.broadcast %71 : vector<8x1xf32> to vector<8x128xf32>
      %73 = arith.subf %68, %72 : vector<8x128xf32>
      %c0_35 = arith.constant 0 : index
      %c0_36 = arith.constant 0 : index
      %74 = vector.load %arg9[%c0_35, %c0_36] : memref<8x128xf32, #tpu.memory_space<vmem>>, vector<8x128xf32>
      tpu.vector_store %arg9[%c0_35, %c0_36], %73 {strides = array<i32>} : memref<8x128xf32, #tpu.memory_space<vmem>>, vector<8x128xf32>,
    } else {
    }
    return
  }
  func.func @transform_0(%arg0: i32, %arg1: i32) -> (i32, i32) {
    %c0_i32 = arith.constant 0 : i32
    %c0_i32_0 = arith.constant 0 : i32
    return %arg1, %c0_i32 : i32, i32
  }
  func.func @transform_1(%arg0: i32, %arg1: i32) -> (i32, i32) {
    %c0_i32 = arith.constant 0 : i32
    %c0_i32_0 = arith.constant 0 : i32
    %c0_i32_1 = arith.constant 0 : i32
    return %c0_i32, %c0_i32_0 : i32, i32
  }
  func.func @transform_2(%arg0: i32, %arg1: i32) -> (i32, i32, i32) {
    %c0_i32 = arith.constant 0 : i32
    %c0_i32_0 = arith.constant 0 : i32
    %c0_i32_1 = arith.constant 0 : i32
    return %arg0, %c0_i32, %c0_i32_0 : i32, i32, i32
  }
  func.func @transform_3(%arg0: i32, %arg1: i32) -> (i32, i32, i32) {
    %c0_i32 = arith.constant 0 : i32
    %c0_i32_0 = arith.constant 0 : i32
    %c0_i32_1 = arith.constant 0 : i32
    return %arg0, %c0_i32, %c0_i32_0 : i32, i32, i32
  }
  func.func @transform_4(%arg0: i32, %arg1: i32) -> (i32, i32) {
    %c0_i32 = arith.constant 0 : i32
    %c0_i32_0 = arith.constant 0 : i32
    return %c0_i32, %arg1 : i32, i32
  }
  func.func @transform_5(%arg0: i32, %arg1: i32) -> (i32, i32) {
    %c0_i32 = arith.constant 0 : i32
    %c0_i32_0 = arith.constant 0 : i32
    %c0_i32_1 = arith.constant 0 : i32
    return %c0_i32, %c0_i32_0 : i32, i32
  }
  func.func @transform_6(%arg0: i32, %arg1: i32) -> (i32, i32) {
    %c0_i32 = arith.constant 0 : i32
    %c0_i32_0 = arith.constant 0 : i32
    %c0_i32_1 = arith.constant 0 : i32
    return %c0_i32, %c0_i32_0 : i32, i32
  }
  func.func @transform_7(%arg0: i32, %arg1: i32) -> (i32, i32) {
    %c0_i32 = arith.constant 0 : i32
    %c0_i32_0 = arith.constant 0 : i32
    %c0_i32_1 = arith.constant 0 : i32
    return %c0_i32, %c0_i32_0 : i32, i32
  }
}

</mosaic_0001>

<bundles_post_ra>
// kernel: tpu_custom_call.1
= control target key start
LH: loop header
LB: loop body
LE: loop exit
PB: predicated region body
PF: predicated region fallthrough
CT: control target
= control target key end

     0   :  { %s1741_s0 = inlined_call_operand.hbm [shape: f32[128,128], index: 0, kind: input, shape index: {}]   ;;  %s1742_s1 = inlined_call_operand.hbm [shape: f32[128,128], index: 1, kind: input, shape index: {}]   ;;  %s1743_s2 = inlined_call_operand.hbm [shape: f32[4,128,128], index: 2, kind: input, shape index: {}]   ;;  %s1744_s3 = inlined_call_operand.hbm [shape: f32[4,1,128], index: 3, kind: input, shape index: {}]   ;;  %s1745_s4 = inlined_call_operand.hbm [shape: f32[8,128], index: 4, kind: input, shape index: {}]   ;;  %s1746_s5 = inlined_call_operand.hbm [shape: f32[128,128], index: 5, kind: input, shape index: {}]   ;;  %s1747_s6 = inlined_call_operand.vmem [shape: f32[1,128], index: 6, kind: input, shape index: {}]   ;;  %s1748_s7 = inlined_call_operand.hbm [shape: f32[8,128], index: 7, kind: output, shape index: {}]  }
   0x1   :  { %1755 = sst [smem:[#allocation22_spill]] %s1741_s0 }
   0x2   :  { %1756 = sst [smem:[#allocation23_spill]] %s1742_s1 }
   0x3   :  { %1757 = sst [smem:[#allocation24_spill]] %s1743_s2 }
   0x4   :  { %1758 = sst [smem:[#allocation25_spill]] %s1745_s4 }
   0x5   :  { %12 = vsyncpa [#allocation5], 0 }
   0x6   :  { %13 = vsyncpa [#allocation8], 0 }
   0x7   :  { %14 = vsyncpa [#allocation13], 0 }
   0x8   :  { %15 = vsyncpa [#allocation6], 0  ;;  %s1443_s24 = smov 0   ;;  %s1445_s25 = smov 0  }
   0x9   :  { %s1447_s26 = smov 0   ;;  %s1449_s27 = smov 0  }
   0xa   :  { %s1451_s28 = smov 0   ;;  %s1453_s29 = smov 0  }
   0xb LB: > { %s1472_s30 = sadd.s32 4294967295, %s1393_s29   ;;  %p100_p0 = scmp.ne.s32.totalorder %s1377_s25, %s1373_s24  ;;  %s1393_s29 = sphi %s1453_s29, %s21_s29   ;;  %s1389_s28 = sphi %s1451_s28, %s1777_s28   ;;  %s1385_s27 = sphi %s1449_s27, %s1776_s27   ;;  %s1381_s26 = sphi %s1447_s26, %s1775_s26   ;;  %s1377_s25 = sphi %s1445_s25, %s1774_s25   ;;  %s1373_s24 = sphi %s1443_s24, %s1773_s24  }
   0xc   : > { %p101_p1 = scmp.eq.s32.totalorder %s1472_s30, 0  ;;  %p936_p2 = scmp.ge.s32.totalorder %s1393_s29, 1 }
   0xd   : > { %p226_p3 = scmp.lt.s32.totalorder %s1393_s29, 5  ;;  %s1760_s0 = sld [smem:[#allocation22_spill]] }
   0xe   : > { %p1480_p4 = por %p101_p1, %p100_p0  ;;  %s1395_s13 = smov [#allocation4]  }
   0xf   : > { %p1487_p5 = pnand %p936_p2, %p226_p3  ;;  %s242_s14 = sshll.u32 %s1395_s13, 4  ;;  %s243_s14 = int_to_ptr.vmem [resolvable:$true] %s242_s14 }
  0x10   : > { %s1763_s1 = sld [smem:[#allocation23_spill]]  ;;  %s1749_s19 = smov 128  }
  0x11   : > { %p1022_p6 = pneg %p1487_p5  ;;  %s1751_s20 = smov 8  }
  0x12   : > { %s1398_s21 = smov [#allocation7]   ;;  %s33_s23 = sadd.s32 1, %s1389_s28 }
  0x13   : > { %s240_s11 = sshll.u32 %s1760_s0, 4  ;;  %p1495_p7 = pnand %p1022_p6, %p101_p1  ;;  %s241_s11 = int_to_ptr.hbm [resolvable:$true] %s240_s11 }
  0x14   : > { %s256_s22 = sshll.u32 %s1398_s21, 4  ;;  %s87_s24 = sadd.s32 1, %s1381_s26  ;;  %s257_s22 = int_to_ptr.vmem [resolvable:$true] %s256_s22 }
  0x15   : > { %1025 = dma.hbm_to_vmem [thread:$0]  (!%p1495_p7), %s241_s11, 2048, %s243_s14, [#allocation5], %s1749_s19, %s1749_s19, %s1751_s20  }
  0x16   : > { %s254_s18 = sshll.u32 %s1763_s1, 4  ;;  %p35_p8 = scmp.ge.s32.totalorder %s33_s23, 4  ;;  %s255_s18 = int_to_ptr.hbm [resolvable:$true] %s254_s18 }
  0x17   : > { %1028 = dma.hbm_to_vmem [thread:$0]  (!%p1495_p7), %s255_s18, 2048, %s257_s22, [#allocation8], %s1749_s19, %s1749_s19, %s1751_s20  }
  0x18   : > { %p94_p9 = scmp.ne.s32.totalorder %s1381_s26, %s1377_s25  ;;  %p95_p10 = scmp.eq.s32.totalorder %s1393_s29, 0 }
  0x19   : > { %p1046_p11 = scmp.lt.s32.totalorder %s1393_s29, 4  ;;  %s1779_s23 = smov (%p35_p8, %s33_s23), 0 }
  0x1a   : > { %1764 = sst [smem:[#allocation21_spill]] %s1779_s23  ;;  %p1520_p12 = por %p95_p10, %p94_p9 }
  0x1b   : > { %s301_s10 = sand.u32 1, %s1393_s29   ;;  %s84_s11 = ssub.s32 %s1389_s28, %s1779_s23 }
  0x1c   : > { %p85_p13 = scmp.eq.s32.totalorder %s84_s11, 0  ;;  %s1753_s13 = sand.u32 1, %s1381_s26  }
  0x1d   : > { %s942_s14 = sshll.u32 %s1753_s13, 7  ;;  %s963_s16 = sshll.u32 %s1389_s28, 7 }
  0x1e   : > { %s1532_s17 = scalar_select %p85_p13, %s1381_s26, %s87_s24  }
  0x1f   : > { %s1766_s2 = sld [smem:[#allocation24_spill]]  ;;  %s305_s20 = scalar_lea.vmem [#allocation9], %s942_s14 }
  0x20   : > { %s313_s0 = sshll.u32 %s305_s20, 4  ;;  %p1541_p0 = pnand %p1046_p11, %p1520_p12  ;;  %s314_s0 = int_to_ptr.vmem [resolvable:$true] %s313_s0 }
  0x21   : > { %s1768_s4 = sld [smem:[#allocation25_spill]]  ;;  %s302_s20 = scalar_lea.sflag [#allocation5], %s301_s10 }
  0x22   : > { %s1769_s21 = smov 8   ;;  %s1400_s13 = smov [#allocation12]  }
  0x23   : > { %s284_s24 = sshll.u32 %s1400_s13, 4  ;;  %s329_s10 = scalar_lea.hbm %s1744_s3, %s1389_s28  ;;  %s285_s24 = int_to_ptr.vmem [resolvable:$true] %s284_s24 }
  0x25   : > { %s310_s22 = scalar_lea.hbm %s1766_s2, %s963_s16  ;;  %s1399_s16 = smov [#allocation11]  }
  0x26   : > { %s311_s19 = sshll.u32 %s310_s22, 4  ;;  %s273_s14 = sshll.u32 %s1399_s16, 4  ;;  %s312_s19 = int_to_ptr.hbm [resolvable:$true] %s311_s19  ;;  %s274_s14 = int_to_ptr.vmem [resolvable:$true] %s273_s14 }
  0x27   : > { %s271_s18 = sshll.u32 %s1768_s4, 4  ;;  %s1770_s22 = smov 128   ;;  %s272_s18 = int_to_ptr.hbm [resolvable:$true] %s271_s18 }
  0x28   : > { %1038 = dma.hbm_to_vmem [thread:$0]  (!%p1541_p0), %s312_s19, 2048, %s314_s0, %s302_s20, %s1770_s22, %s1770_s22, %s1769_s21  }
  0x29   : > { %s282_s2 = sshll.u32 %s1746_s5, 4  ;;  %s331_s0 = sshll.u32 %s329_s10, 4  ;;  %s283_s2 = int_to_ptr.hbm [resolvable:$true] %s282_s2  ;;  %s332_s0 = int_to_ptr.hbm [resolvable:$true] %s331_s0 }
  0x2a   : > { %1031 = dma.hbm_to_vmem [thread:$0]  (!%p1495_p7), %s272_s18, 128, %s274_s14, [#allocation8]  }
  0x2b   : > { %1034 = dma.hbm_to_vmem [thread:$0]  (!%p1495_p7), %s283_s2, 2048, %s285_s24, [#allocation13], %s1770_s22, %s1770_s22, %s1769_s21  }
  0x2c   : > { %s1771_s19 = sand.u32 1, %s1381_s26   ;;  %342 = sbr.rel (%p1487_p5) target bundleno = 1035 (0x40b), region = 48 }
  0x2d   : > { %s326_s23 = scalar_lea.vmem [#allocation10], %s1771_s19 }
  0x2e   : > { %s333_s1 = sshll.u32 %s326_s23, 4  ;;  %s334_s1 = int_to_ptr.vmem [resolvable:$true] %s333_s1 }
  0x2f   : > { %1041 = dma.hbm_to_vmem [thread:$0]  (!%p1541_p0), %s332_s0, 16, %s334_s1, %s302_s20  }
  0x31   : > { %1348 = dma.done.wait (%p101_p1), [#allocation5], 2048  }
  0x32   : > { %1350 = vsyncadd (%p101_p1), [#allocation5], 4294965248 }
  0x33   : > { %1352 = dma.done.wait (%p101_p1), [#allocation8], 2048  }
  0x34   : > { %1354 = vsyncadd (%p101_p1), [#allocation8], 4294965248  ;;  %s354_s2 = sand.u32 1, %s1472_s30   ;;  %s356_s4 = sand.u32 1, %s1377_s25  }
  0x35   : > { %s948_s15 = sshll.u32 %s356_s4, 7  ;;  %s355_s12 = scalar_lea.sflag [#allocation5], %s354_s2 }
  0x36   : > { %s1583_s23 = scalar_lea.vmem [#allocation9], %s948_s15 }
  0x37   : > { %1356 = dma.done.wait (%p1480_p4), %s355_s12, 2064  }
  0x38   : > { %1358 = vsyncadd (%p1480_p4), %s355_s12, 4294965232  ;;  %s1589_s11 = scalar_lea.vmem [#allocation10], %s356_s4 }
  0x39   : > { %1360 = dma.done.wait (%p101_p1), [#allocation8], 128  }
  0x3a   : > { %1362 = vsyncadd (%p101_p1), [#allocation8], 4294967168 }
  0x3b   : > { %1364 = dma.done.wait (%p101_p1), [#allocation13], 2048  }
  0x3c   : > { %1366 = vsyncadd (%p101_p1), [#allocation13], 4294965248  ;;  %p409_p2 = scmp.eq.s32.totalorder %s1385_s27, 0 }
  0x3d   : > { %v415_v0 = vld [vmem:[#allocation7] sm:$0xff] (%p409_p2)  ;;  %v416_v1 = vld [vmem:[#allocation7 + $0x8] sm:$0xff] (%p409_p2)  ;;  %v417_v2 = vld [vmem:[#allocation7 + $0x10] sm:$0xff] (%p409_p2) }
  0x3e   : > { %414 = sbr.rel (!%p409_p2) target bundleno = 78 (0x4e), region = 76  ;;  %431 = vst [vmem:[#allocation2] sm:$0xff] (%p409_p2), %v415_v0  ;;  %v418_v3 = vld [vmem:[#allocation7 + $0x18] sm:$0xff] (%p409_p2)  ;;  %v419_v4 = vld [vmem:[#allocation7 + $0x20] sm:$0xff] (%p409_p2)  ;;  %v420_v5 = vld [vmem:[#allocation7 + $0x28] sm:$0xff] (%p409_p2) }
  0x3f   : > { %432 = vst [vmem:[#allocation2 + $0x8] sm:$0xff] (%p409_p2), %v416_v1  ;;  %v421_v6 = vld [vmem:[#allocation7 + $0x30] sm:$0xff] (%p409_p2)  ;;  %v422_v7 = vld [vmem:[#allocation7 + $0x38] sm:$0xff] (%p409_p2)  ;;  %v423_v8 = vld [vmem:[#allocation7 + $0x40] sm:$0xff] (%p409_p2) }
  0x40   : > { %433 = vst [vmem:[#allocation2 + $0x10] sm:$0xff] (%p409_p2), %v417_v2  ;;  %v424_v9 = vld [vmem:[#allocation7 + $0x48] sm:$0xff] (%p409_p2)  ;;  %v425_v10 = vld [vmem:[#allocation7 + $0x50] sm:$0xff] (%p409_p2)  ;;  %v426_v11 = vld [vmem:[#allocation7 + $0x58] sm:$0xff] (%p409_p2) }
  0x41   : > { %434 = vst [vmem:[#allocation2 + $0x18] sm:$0xff] (%p409_p2), %v418_v3  ;;  %v427_v12 = vld [vmem:[#allocation7 + $0x60] sm:$0xff] (%p409_p2)  ;;  %v428_v13 = vld [vmem:[#allocation7 + $0x68] sm:$0xff] (%p409_p2)  ;;  %v429_v14 = vld [vmem:[#allocation7 + $0x70] sm:$0xff] (%p409_p2) }
  0x42   : > { %435 = vst [vmem:[#allocation2 + $0x20] sm:$0xff] (%p409_p2), %v419_v4  ;;  %v430_v15 = vld [vmem:[#allocation7 + $0x78] sm:$0xff] (%p409_p2) }
  0x43   : > { %436 = vst [vmem:[#allocation2 + $0x28] sm:$0xff] %v420_v5 }
  0x44   : > { %437 = vst [vmem:[#allocation2 + $0x30] sm:$0xff] %v421_v6 }
  0x45   : > { %438 = vst [vmem:[#allocation2 + $0x38] sm:$0xff] %v422_v7 }
  0x46   : > { %439 = vst [vmem:[#allocation2 + $0x40] sm:$0xff] %v423_v8 }
  0x47   : > { %440 = vst [vmem:[#allocation2 + $0x48] sm:$0xff] %v424_v9 }
  0x48   : > { %441 = vst [vmem:[#allocation2 + $0x50] sm:$0xff] %v425_v10 }
  0x49   : > { %442 = vst [vmem:[#allocation2 + $0x58] sm:$0xff] %v426_v11 }
  0x4a   : > { %443 = vst [vmem:[#allocation2 + $0x60] sm:$0xff] %v427_v12 }
  0x4b   : > { %444 = vst [vmem:[#allocation2 + $0x68] sm:$0xff] %v428_v13 }
  0x4c   : > { %445 = vst [vmem:[#allocation2 + $0x70] sm:$0xff] %v429_v14 }
  0x4d   : > { %446 = vst [vmem:[#allocation2 + $0x78] sm:$0xff] %v430_v15 }
  0x4e PF: > { %p447_p1 = scmp.lt.s32.totalorder %s1385_s27, 0  ;;  %s448_s8 = ssub.s32 0, %s1385_s27  ;;  %v469_v32 = vld [vmem:[#allocation4 + $0x40] sm:$0xff]  ;;  %v470_v34 = vld [vmem:[#allocation4 + $0x48] sm:$0xff]  ;;  %v471_v36 = vld [vmem:[#allocation4 + $0x50] sm:$0xff] }
  0x4f   : > { %s952_s18 = smin.u32 %s1385_s27, %s448_s8  ;;  %v461_v33 = vld [vmem:[#allocation4] sm:$0xff]  ;;  %v462_v35 = vld [vmem:[#allocation4 + $0x8] sm:$0xff]  ;;  %v463_v37 = vld [vmem:[#allocation4 + $0x10] sm:$0xff]  ;;  %p712_p4 = scmp.eq.s32.totalorder %s1385_s27, 3 }
  0x50   : > { %s450_s14 = sand.u32 1, %s952_s18   ;;  %v472_v38 = vld [vmem:[#allocation4 + $0x58] sm:$0xff]  ;;  %v574_v41 = vld [vmem:[%s1583_s23 + $0x70] sm:$0xff]  ;;  %v573_v42 = vld [vmem:[%s1583_s23 + $0x68] sm:$0xff] }
  0x51   : > { %s451_s20 = ssub.s32 0, %s450_s14  ;;  %v464_v39 = vld [vmem:[#allocation4 + $0x18] sm:$0xff]  ;;  %v572_v43 = vld [vmem:[%s1583_s23 + $0x60] sm:$0xff]  ;;  %v570_v47 = vld [vmem:[%s1583_s23 + $0x50] sm:$0xff] }
  0x52   : > { %s1781_s20 = smov (!%p447_p1, %s451_s20), %s450_s14  ;;  %v575_v40 = vld [vmem:[%s1583_s23 + $0x78] sm:$0xff]  ;;  %v473_v44 = vld [vmem:[#allocation4 + $0x60] sm:$0xff]  ;;  %v569_v48 = vld [vmem:[%s1583_s23 + $0x48] sm:$0xff] }
  0x53   : > { %p954_p3 = scmp.lt.s32.totalorder %s1781_s20, 0  ;;  %s457_s21 = sadd.s32 2, %s1781_s20  ;;  %982 = vmatpush.msra.mxu3 %v575_v40  ;;  %580 = vmatpush.msra.mxu1 %v575_v40  ;;  %v465_v45 = vld [vmem:[#allocation4 + $0x20] sm:$0xff]  ;;  %v571_v46 = vld [vmem:[%s1583_s23 + $0x58] sm:$0xff]  ;;  %v474_v50 = vld [vmem:[#allocation4 + $0x68] sm:$0xff] }
  0x54   : > { %v568_v49 = vld [vmem:[%s1583_s23 + $0x40] sm:$0xff]  ;;  %v466_v51 = vld [vmem:[#allocation4 + $0x28] sm:$0xff]  ;;  %v567_v52 = vld [vmem:[%s1583_s23 + $0x38] sm:$0xff] }
  0x55   : > { %s1783_s21 = smov (!%p954_p3, %s457_s21), %s1781_s20  ;;  %983 = vmatpush.msra.mxu3 %v574_v41  ;;  %581 = vmatpush.msra.mxu1 %v574_v41  ;;  %v566_v53 = vld [vmem:[%s1583_s23 + $0x30] sm:$0xff]  ;;  %v565_v54 = vld [vmem:[%s1583_s23 + $0x28] sm:$0xff]  ;;  %v564_v55 = vld [vmem:[%s1583_s23 + $0x20] sm:$0xff] }
  0x56   : > { %s955_s22 = sshll.u32 %s1783_s21, 7  ;;  %v475_v56 = vld [vmem:[#allocation4 + $0x70] sm:$0xff]  ;;  %v563_v58 = vld [vmem:[%s1583_s23 + $0x18] sm:$0xff]  ;;  %v561_v60 = vld [vmem:[%s1583_s23 + $0x8] sm:$0xff]  ;;  %s459_s13 = ssub.s32 1, %s1783_s21 }
  0x57   : > { %s1606_s9 = scalar_lea.vmem [#allocation2], %s955_s22  ;;  %984 = vmatpush.msra.mxu3 %v573_v42  ;;  %582 = vmatpush.msra.mxu1 %v573_v42  ;;  %v467_v57 = vld [vmem:[#allocation4 + $0x30] sm:$0xff]  ;;  %v476_v61 = vld [vmem:[#allocation4 + $0x78] sm:$0xff]  ;;  %v560_v63 = vld [vmem:[%s1583_s23] sm:$0xff]  ;;  %s956_s24 = sshll.u32 %s459_s13, 7 }
  0x58   : > { %v494_v16 = vld [vmem:[%s1606_s9 + $0x78] sm:$0xff]  ;;  %v493_v17 = vld [vmem:[%s1606_s9 + $0x70] sm:$0xff]  ;;  %v492_v18 = vld [vmem:[%s1606_s9 + $0x68] sm:$0xff]  ;;  %s1648_s16 = scalar_lea.vmem [#allocation2], %s956_s24 }
  0x59   : > { %966 = vmatpush.msra.mxu2 %v494_v16  ;;  %495 = vmatpush.msra.mxu0 %v494_v16  ;;  %v491_v19 = vld [vmem:[%s1606_s9 + $0x60] sm:$0xff]  ;;  %v490_v20 = vld [vmem:[%s1606_s9 + $0x58] sm:$0xff]  ;;  %v489_v21 = vld [vmem:[%s1606_s9 + $0x50] sm:$0xff] }
  0x5a   : > { %v488_v22 = vld [vmem:[%s1606_s9 + $0x48] sm:$0xff]  ;;  %v487_v23 = vld [vmem:[%s1606_s9 + $0x40] sm:$0xff]  ;;  %v486_v24 = vld [vmem:[%s1606_s9 + $0x38] sm:$0xff]  ;;  %985 = vmatpush.msra.mxu3 %v572_v43  ;;  %583 = vmatpush.msra.mxu1 %v572_v43 }
  0x5b   : > { %967 = vmatpush.msra.mxu2 %v493_v17  ;;  %496 = vmatpush.msra.mxu0 %v493_v17  ;;  %v485_v25 = vld [vmem:[%s1606_s9 + $0x30] sm:$0xff]  ;;  %v484_v26 = vld [vmem:[%s1606_s9 + $0x28] sm:$0xff]  ;;  %v483_v27 = vld [vmem:[%s1606_s9 + $0x20] sm:$0xff] }
  0x5c   : > { %v482_v28 = vld [vmem:[%s1606_s9 + $0x18] sm:$0xff]  ;;  %v481_v29 = vld [vmem:[%s1606_s9 + $0x10] sm:$0xff]  ;;  %v480_v30 = vld [vmem:[%s1606_s9 + $0x8] sm:$0xff]  ;;  %986 = vmatpush.msra.mxu3 %v571_v46  ;;  %584 = vmatpush.msra.mxu1 %v571_v46 }
  0x5d   : > { %968 = vmatpush.msra.mxu2 %v492_v18  ;;  %497 = vmatpush.msra.mxu0 %v492_v18  ;;  %v479_v31 = vld [vmem:[%s1606_s9] sm:$0xff]  ;;  %v562_v59 = vld [vmem:[%s1583_s23 + $0x10] sm:$0xff] }
  0x5e   : > { %987 = vmatpush.msra.mxu3 %v570_v47  ;;  %585 = vmatpush.msra.mxu1 %v570_v47  ;;  %v468_v62 = vld [vmem:[#allocation4 + $0x38] sm:$0xff] }
  0x5f   : > { %969 = vmatpush.msra.mxu2 %v491_v19  ;;  %498 = vmatpush.msra.mxu0 %v491_v19  ;;  %v1643_v16 = vld [vmem:[%s1589_s11] ss:$0 sm:$0xff] }
  0x60   : > { %988 = vmatpush.msra.mxu3 %v569_v48  ;;  %586 = vmatpush.msra.mxu1 %v569_v48 }
  0x61   : > { %970 = vmatpush.msra.mxu2 %v490_v20  ;;  %499 = vmatpush.msra.mxu0 %v490_v20 }
  0x62   : > { %989 = vmatpush.msra.mxu3 %v568_v49  ;;  %587 = vmatpush.msra.mxu1 %v568_v49 }
  0x63   : > { %971 = vmatpush.msra.mxu2 %v489_v21  ;;  %500 = vmatpush.msra.mxu0 %v489_v21 }
  0x64   : > { %990 = vmatpush.msra.mxu3 %v567_v52  ;;  %588 = vmatpush.msra.mxu1 %v567_v52 }
  0x65   : > { %972 = vmatpush.msra.mxu2 %v488_v22  ;;  %501 = vmatpush.msra.mxu0 %v488_v22 }
  0x66   : > { %991 = vmatpush.msra.mxu3 %v566_v53  ;;  %589 = vmatpush.msra.mxu1 %v566_v53 }
  0x67   : > { %973 = vmatpush.msra.mxu2 %v487_v23  ;;  %502 = vmatpush.msra.mxu0 %v487_v23 }
  0x68   : > { %992 = vmatpush.msra.mxu3 %v565_v54  ;;  %590 = vmatpush.msra.mxu1 %v565_v54 }
  0x69   : > { %974 = vmatpush.msra.mxu2 %v486_v24  ;;  %503 = vmatpush.msra.mxu0 %v486_v24 }
  0x6a   : > { %993 = vmatpush.msra.mxu3 %v564_v55  ;;  %591 = vmatpush.msra.mxu1 %v564_v55 }
  0x6b   : > { %975 = vmatpush.msra.mxu2 %v485_v25  ;;  %504 = vmatpush.msra.mxu0 %v485_v25 }
  0x6c   : > { %994 = vmatpush.msra.mxu3 %v563_v58  ;;  %592 = vmatpush.msra.mxu1 %v563_v58 }
  0x6d   : > { %976 = vmatpush.msra.mxu2 %v484_v26  ;;  %505 = vmatpush.msra.mxu0 %v484_v26 }
  0x6e   : > { %995 = vmatpush.msra.mxu3 %v562_v59  ;;  %593 = vmatpush.msra.mxu1 %v562_v59 }
  0x6f   : > { %977 = vmatpush.msra.mxu2 %v483_v27  ;;  %506 = vmatpush.msra.mxu0 %v483_v27 }
  0x70   : > { %996 = vmatpush.msra.mxu3 %v561_v60  ;;  %594 = vmatpush.msra.mxu1 %v561_v60 }
  0x71   : > { %978 = vmatpush.msra.mxu2 %v482_v28  ;;  %507 = vmatpush.msra.mxu0 %v482_v28 }
  0x72   : > { %997 = vmatpush.msra.mxu3 %v560_v63  ;;  %595 = vmatpush.msra.mxu1 %v560_v63 }
  0x73   : > { %979 = vmatpush.msra.mxu2 %v481_v29  ;;  %508 = vmatpush.msra.mxu0 %v481_v29 }
  0x75   : > { %980 = vmatpush.msra.mxu2 %v480_v30  ;;  %509 = vmatpush.msra.mxu0 %v480_v30 }
  0x77   : > { %981 = vmatpush.msra.mxu2 %v479_v31  ;;  %510 = vmatpush.msra.mxu0 %v479_v31 }
  0x78   : > { %535 = vmatmul.f32.vlgmr.msra.gmra.mxu2 %v469_v32  ;;  %511 = vmatmul.f32.vlgmr.msra.gmra.mxu0 %v461_v33 }
  0x80   : > { %538 = vmatmul.f32.gmra.mxu2 %v470_v34  ;;  %514 = vmatmul.f32.gmra.mxu0 %v462_v35 }
  0x88   : > { %541 = vmatmul.f32.gmra.mxu2 %v471_v36  ;;  %517 = vmatmul.f32.gmra.mxu0 %v463_v37 }
  0x90   : > { %544 = vmatmul.f32.gmra.mxu2 %v472_v38  ;;  %520 = vmatmul.f32.gmra.mxu0 %v464_v39 }
  0x98   : > { %547 = vmatmul.f32.gmra.mxu2 %v473_v44  ;;  %523 = vmatmul.f32.gmra.mxu0 %v465_v45 }
  0xa0   : > { %550 = vmatmul.f32.gmra.mxu2 %v474_v50  ;;  %526 = vmatmul.f32.gmra.mxu0 %v466_v51 }
  0xa8   : > { %553 = vmatmul.f32.gmra.mxu2 %v475_v56  ;;  %529 = vmatmul.f32.gmra.mxu0 %v467_v57 }
  0xb0   : > { %556 = vmatmul.f32.gmra.mxu2 %v476_v61  ;;  %532 = vmatmul.f32.gmra.mxu0 %v468_v62 }
  0xf5   : > { %v512_v0 = vpop.f32.mrf.mxu0 }
  0xf6   : > { %596 = vmatmul.f32.vlgmr.msra.gmra.mxu1 %v512_v0 }
  0xfb   : > { %v536_v1 = vpop.f32.mrf.mxu2 }
  0xfc   : > { %620 = vmatmul.f32.vlgmr.msra.gmra.mxu3 %v536_v1 }
  0xfd   : > { %v515_v2 = vpop.f32.mrf.mxu0 }
  0xfe   : > { %599 = vmatmul.f32.gmra.mxu1 %v515_v2 }
 0x103   : > { %v539_v3 = vpop.f32.mrf.mxu2 }
 0x104   : > { %623 = vmatmul.f32.gmra.mxu3 %v539_v3 }
 0x105   : > { %v518_v4 = vpop.f32.mrf.mxu0 }
 0x106   : > { %602 = vmatmul.f32.gmra.mxu1 %v518_v4 }
 0x10b   : > { %v542_v5 = vpop.f32.mrf.mxu2 }
 0x10c   : > { %626 = vmatmul.f32.gmra.mxu3 %v542_v5 }
 0x10d   : > { %v521_v6 = vpop.f32.mrf.mxu0 }
 0x10e   : > { %605 = vmatmul.f32.gmra.mxu1 %v521_v6 }
 0x113   : > { %v545_v7 = vpop.f32.mrf.mxu2 }
 0x114   : > { %629 = vmatmul.f32.gmra.mxu3 %v545_v7 }
 0x115   : > { %v524_v8 = vpop.f32.mrf.mxu0 }
 0x116   : > { %608 = vmatmul.f32.gmra.mxu1 %v524_v8 }
 0x11b   : > { %v548_v9 = vpop.f32.mrf.mxu2 }
 0x11c   : > { %632 = vmatmul.f32.gmra.mxu3 %v548_v9 }
 0x11d   : > { %v527_v10 = vpop.f32.mrf.mxu0 }
 0x11e   : > { %611 = vmatmul.f32.gmra.mxu1 %v527_v10 }
 0x123   : > { %v551_v11 = vpop.f32.mrf.mxu2 }
 0x124   : > { %635 = vmatmul.f32.gmra.mxu3 %v551_v11 }
 0x125   : > { %v530_v12 = vpop.f32.mrf.mxu0 }
 0x126   : > { %614 = vmatmul.f32.gmra.mxu1 %v530_v12 }
 0x12b   : > { %v554_v13 = vpop.f32.mrf.mxu2 }
 0x12c   : > { %638 = vmatmul.f32.gmra.mxu3 %v554_v13 }
 0x12d   : > { %v533_v14 = vpop.f32.mrf.mxu0 }
 0x12e   : > { %617 = vmatmul.f32.gmra.mxu1 %v533_v14 }
 0x133   : > { %v557_v15 = vpop.f32.mrf.mxu2 }
 0x134   : > { %641 = vmatmul.f32.gmra.mxu3 %v557_v15 }
 0x173   : > { %v597_v17 = vpop.f32.mrf.mxu1 }
 0x174   : > { %v598_v18 = vadd.f32 %v1643_v16, %v597_v17 }
 0x176   : > { %vm645_vm0 = vcmp.gt.f32.partialorder %v598_v18, 0.0  ;;  %v661_v19 = vmul.f32 0.01, %v598_v18 }
 0x178   : > { %v1646_v20 = vsel %vm645_vm0, %v598_v18, %v661_v19  ;;  %v1401_v18 = vmov (%p712_p4), 0.0  }
 0x179   : > { %696 = vst [vmem:[%s1648_s16] sm:$0xff] %v1646_v20 }
 0x17a   : > { %717 = vst [vmem:[#allocation3] sm:$0xff] (%p712_p4), %v1401_v18 }
 0x17b   : > { %v600_v21 = vpop.f32.mrf.mxu1 }
 0x17c   : > { %v601_v22 = vadd.f32 %v1643_v16, %v600_v21 }
 0x17e   : > { %vm646_vm1 = vcmp.gt.f32.partialorder %v601_v22, 0.0  ;;  %v662_v23 = vmul.f32 0.01, %v601_v22 }
 0x17f   : > { %v621_v24 = vpop.f32.mrf.mxu3 }
 0x180   : > { %v622_v25 = vadd.f32 %v1643_v16, %v621_v24  ;;  %v1654_v26 = vsel %vm646_vm1, %v601_v22, %v662_v23 }
 0x181   : > { %697 = vst [vmem:[%s1648_s16 + $0x8] sm:$0xff] %v1654_v26 }
 0x182   : > { %vm653_vm2 = vcmp.gt.f32.partialorder %v622_v25, 0.0  ;;  %v669_v27 = vmul.f32 0.01, %v622_v25 }
 0x183   : > { %v603_v28 = vpop.f32.mrf.mxu1 }
 0x184   : > { %v1658_v29 = vsel %vm653_vm2, %v622_v25, %v669_v27  ;;  %v604_v30 = vadd.f32 %v1643_v16, %v603_v28 }
 0x185   : > { %704 = vst [vmem:[%s1648_s16 + $0x40] sm:$0xff] %v1658_v29 }
 0x186   : > { %vm647_vm3 = vcmp.gt.f32.partialorder %v604_v30, 0.0  ;;  %v663_v31 = vmul.f32 0.01, %v604_v30 }
 0x187   : > { %v624_v32 = vpop.f32.mrf.mxu3 }
 0x188   : > { %v625_v33 = vadd.f32 %v1643_v16, %v624_v32  ;;  %v1664_v34 = vsel %vm647_vm3, %v604_v30, %v663_v31 }
 0x189   : > { %698 = vst [vmem:[%s1648_s16 + $0x10] sm:$0xff] %v1664_v34 }
 0x18a   : > { %vm654_vm4 = vcmp.gt.f32.partialorder %v625_v33, 0.0  ;;  %v670_v35 = vmul.f32 0.01, %v625_v33 }
 0x18b   : > { %v606_v36 = vpop.f32.mrf.mxu1 }
 0x18c   : > { %v1668_v37 = vsel %vm654_vm4, %v625_v33, %v670_v35  ;;  %v607_v38 = vadd.f32 %v1643_v16, %v606_v36 }
 0x18d   : > { %705 = vst [vmem:[%s1648_s16 + $0x48] sm:$0xff] %v1668_v37 }
 0x18e   : > { %vm648_vm5 = vcmp.gt.f32.partialorder %v607_v38, 0.0  ;;  %v664_v39 = vmul.f32 0.01, %v607_v38 }
 0x18f   : > { %v627_v40 = vpop.f32.mrf.mxu3 }
 0x190   : > { %v628_v41 = vadd.f32 %v1643_v16, %v627_v40  ;;  %v1674_v42 = vsel %vm648_vm5, %v607_v38, %v664_v39 }
 0x191   : > { %699 = vst [vmem:[%s1648_s16 + $0x18] sm:$0xff] %v1674_v42 }
 0x192   : > { %vm655_vm6 = vcmp.gt.f32.partialorder %v628_v41, 0.0  ;;  %v671_v43 = vmul.f32 0.01, %v628_v41 }
 0x193   : > { %v609_v44 = vpop.f32.mrf.mxu1 }
 0x194   : > { %v1678_v45 = vsel %vm655_vm6, %v628_v41, %v671_v43  ;;  %v610_v46 = vadd.f32 %v1643_v16, %v609_v44 }
 0x195   : > { %706 = vst [vmem:[%s1648_s16 + $0x50] sm:$0xff] %v1678_v45 }
 0x196   : > { %vm649_vm7 = vcmp.gt.f32.partialorder %v610_v46, 0.0  ;;  %v665_v47 = vmul.f32 0.01, %v610_v46 }
 0x197   : > { %v630_v48 = vpop.f32.mrf.mxu3 }
 0x198   : > { %v631_v49 = vadd.f32 %v1643_v16, %v630_v48  ;;  %v1684_v50 = vsel %vm649_vm7, %v610_v46, %v665_v47 }
 0x199   : > { %700 = vst [vmem:[%s1648_s16 + $0x20] sm:$0xff] %v1684_v50 }
 0x19a   : > { %vm656_vm8 = vcmp.gt.f32.partialorder %v631_v49, 0.0  ;;  %v672_v51 = vmul.f32 0.01, %v631_v49 }
 0x19b   : > { %v612_v52 = vpop.f32.mrf.mxu1 }
 0x19c   : > { %v688_v53 = vsel %vm656_vm8, %v631_v49, %v672_v51  ;;  %v613_v54 = vadd.f32 %v1643_v16, %v612_v52 }
 0x19d   : > { %707 = vst [vmem:[%s1648_s16 + $0x58] sm:$0xff] %v688_v53 }
 0x19e   : > { %vm650_vm9 = vcmp.gt.f32.partialorder %v613_v54, 0.0  ;;  %v666_v55 = vmul.f32 0.01, %v613_v54 }
 0x19f   : > { %v633_v56 = vpop.f32.mrf.mxu3 }
 0x1a0   : > { %v634_v57 = vadd.f32 %v1643_v16, %v633_v56  ;;  %v682_v58 = vsel %vm650_vm9, %v613_v54, %v666_v55 }
 0x1a1   : > { %701 = vst [vmem:[%s1648_s16 + $0x28] sm:$0xff] %v682_v58 }
 0x1a2   : > { %vm657_vm10 = vcmp.gt.f32.partialorder %v634_v57, 0.0  ;;  %v673_v59 = vmul.f32 0.01, %v634_v57 }
 0x1a3   : > { %v615_v60 = vpop.f32.mrf.mxu1 }
 0x1a4   : > { %v689_v61 = vsel %vm657_vm10, %v634_v57, %v673_v59  ;;  %v616_v62 = vadd.f32 %v1643_v16, %v615_v60 }
 0x1a5   : > { %708 = vst [vmem:[%s1648_s16 + $0x60] sm:$0xff] %v689_v61 }
 0x1a6   : > { %vm651_vm11 = vcmp.gt.f32.partialorder %v616_v62, 0.0  ;;  %v667_v63 = vmul.f32 0.01, %v616_v62 }
 0x1a7   : > { %v636_v0 = vpop.f32.mrf.mxu3 }
 0x1a8   : > { %v637_v1 = vadd.f32 %v1643_v16, %v636_v0  ;;  %v683_v2 = vsel %vm651_vm11, %v616_v62, %v667_v63 }
 0x1a9   : > { %702 = vst [vmem:[%s1648_s16 + $0x30] sm:$0xff] %v683_v2 }
 0x1aa   : > { %vm658_vm12 = vcmp.gt.f32.partialorder %v637_v1, 0.0  ;;  %v674_v3 = vmul.f32 0.01, %v637_v1 }
 0x1ab   : > { %v618_v4 = vpop.f32.mrf.mxu1 }
 0x1ac   : > { %v690_v5 = vsel %vm658_vm12, %v637_v1, %v674_v3  ;;  %v619_v6 = vadd.f32 %v1643_v16, %v618_v4 }
 0x1ad   : > { %709 = vst [vmem:[%s1648_s16 + $0x68] sm:$0xff] %v690_v5 }
 0x1ae   : > { %vm652_vm13 = vcmp.gt.f32.partialorder %v619_v6, 0.0  ;;  %v668_v7 = vmul.f32 0.01, %v619_v6 }
 0x1af   : > { %v639_v8 = vpop.f32.mrf.mxu3 }
 0x1b0   : > { %v640_v9 = vadd.f32 %v1643_v16, %v639_v8  ;;  %v684_v10 = vsel %vm652_vm13, %v619_v6, %v668_v7 }
 0x1b1   : > { %703 = vst [vmem:[%s1648_s16 + $0x38] sm:$0xff] %v684_v10 }
 0x1b2   : > { %vm659_vm14 = vcmp.gt.f32.partialorder %v640_v9, 0.0  ;;  %v675_v11 = vmul.f32 0.01, %v640_v9 }
 0x1b4   : > { %v691_v12 = vsel %vm659_vm14, %v640_v9, %v675_v11 }
 0x1b5   : > { %710 = vst [vmem:[%s1648_s16 + $0x70] sm:$0xff] %v691_v12 }
 0x1b7   : > { %v642_v13 = vpop.f32.mrf.mxu3 }
 0x1b8   : > { %v643_v14 = vadd.f32 %v1643_v16, %v642_v13 }
 0x1b9   : > { %716 = sbr.rel (!%p712_p4) target bundleno = 446 (0x1be), region = 80 }
 0x1ba   : > { %vm660_vm15 = vcmp.gt.f32.partialorder %v643_v14, 0.0  ;;  %v676_v15 = vmul.f32 0.01, %v643_v14 }
 0x1bc   : > { %v692_v17 = vsel %vm660_vm15, %v643_v14, %v676_v15 }
 0x1bd   : > { %711 = vst [vmem:[%s1648_s16 + $0x78] sm:$0xff] %v692_v17 }
 0x1be PF: > { %p958_p5 = scmp.ne.s32.totalorder %s1385_s27, 3 }
 0x1c0   : > { %720 = sbr.rel (%p958_p5) target bundleno = 613 (0x265), region = 84 }
 0x1c5   : > { %723 = vmatpush.msra.mxu0 %v692_v17  ;;  %v722_v16 = vld [vmem:[#allocation11] sm:$0xff]  ;;  %v721_v19 = vld [vmem:[#allocation3] sm:$0xff] }
 0x1c7   : > { %724 = vmatpush.msra.mxu0 %v691_v12 }
 0x1c9   : > { %725 = vmatpush.msra.mxu0 %v690_v5 }
 0x1cb   : > { %726 = vmatpush.msra.mxu0 %v689_v61 }
 0x1cd   : > { %727 = vmatpush.msra.mxu0 %v688_v53 }
 0x1cf   : > { %728 = vmatpush.msra.mxu0 %v1678_v45 }
 0x1d1   : > { %729 = vmatpush.msra.mxu0 %v1668_v37 }
 0x1d3   : > { %730 = vmatpush.msra.mxu0 %v1658_v29 }
 0x1d5   : > { %731 = vmatpush.msra.mxu0 %v684_v10 }
 0x1d7   : > { %732 = vmatpush.msra.mxu0 %v683_v2 }
 0x1d9   : > { %733 = vmatpush.msra.mxu0 %v682_v58 }
 0x1db   : > { %734 = vmatpush.msra.mxu0 %v1684_v50 }
 0x1dd   : > { %735 = vmatpush.msra.mxu0 %v1674_v42 }
 0x1df   : > { %736 = vmatpush.msra.mxu0 %v1664_v34 }
 0x1e1   : > { %737 = vmatpush.msra.mxu0 %v1654_v26 }
 0x1e3   : > { %738 = vmatpush.msra.mxu0 %v1646_v20 }
 0x1e4   : > { %739 = vmatmul.f32.vlgmr.msra.gmra.mxu0 %v722_v16 }
 0x261   : > { %v740_v21 = vpop.f32.mrf.mxu0 }
 0x262   : > { %v743_v22 = vadd.f32 %v740_v21, %v721_v19 }
 0x264   : > { %744 = vst [vmem:[#allocation3] sm:$0xff] %v743_v22 }
 0x265 PF: > { %746 = sbr.rel (!%p712_p4) target bundleno = 1029 (0x405), region = 88  ;;  %v763_v23 = vld [vmem:[#allocation12 + $0x78] sm:$0xff] (%p712_p4)  ;;  %v762_v24 = vld [vmem:[#allocation12 + $0x70] sm:$0xff] (%p712_p4)  ;;  %v761_v25 = vld [vmem:[#allocation12 + $0x68] sm:$0xff] (%p712_p4)  ;;  %v788_v39 = vlaneseq (%p712_p4) }
 0x266   : > { %768 = vmatpush.msra.mxu0 (%p712_p4), %v763_v23  ;;  %v760_v27 = vld [vmem:[#allocation12 + $0x60] sm:$0xff] (%p712_p4)  ;;  %v759_v26 = vld [vmem:[#allocation12 + $0x58] sm:$0xff] (%p712_p4)  ;;  %v758_v28 = vld [vmem:[#allocation12 + $0x50] sm:$0xff] (%p712_p4) }
 0x267   : > { %v757_v20 = vld [vmem:[#allocation12 + $0x48] sm:$0xff] (%p712_p4)  ;;  %v756_v29 = vld [vmem:[#allocation12 + $0x40] sm:$0xff] (%p712_p4)  ;;  %v755_v30 = vld [vmem:[#allocation12 + $0x38] sm:$0xff] (%p712_p4)  ;;  %v789_v40 = vand.u32 (%p712_p4), 127, %v788_v39 }
 0x268   : > { %769 = vmatpush.msra.mxu0 (%p712_p4), %v762_v24  ;;  %v754_v31 = vld [vmem:[#allocation12 + $0x30] sm:$0xff] (%p712_p4)  ;;  %v753_v32 = vld [vmem:[#allocation12 + $0x28] sm:$0xff] (%p712_p4)  ;;  %v752_v33 = vld [vmem:[#allocation12 + $0x20] sm:$0xff] (%p712_p4) }
 0x269   : > { %v751_v34 = vld [vmem:[#allocation12 + $0x18] sm:$0xff] (%p712_p4)  ;;  %v750_v35 = vld [vmem:[#allocation12 + $0x10] sm:$0xff] (%p712_p4)  ;;  %v749_v36 = vld [vmem:[#allocation12 + $0x8] sm:$0xff] (%p712_p4)  ;;  %vm790_vm0 = vcmp.lt.s32.totalorder (%p712_p4), %v789_v40, 4 }
 0x26a   : > { %770 = vmatpush.msra.mxu0 %v761_v25  ;;  %v748_v37 = vld [vmem:[#allocation12] sm:$0xff]  ;;  %v1110_v41 = vld [vmem:[%s1747_s6] ss:$0 sm:$0xff] }
 0x26b   : > { %v747_v38 = vld [vmem:[#allocation3] sm:$0xff] }
 0x26c   : > { %771 = vmatpush.msra.mxu0 %v760_v27 }
 0x26e   : > { %772 = vmatpush.msra.mxu0 %v759_v26 }
 0x270   : > { %773 = vmatpush.msra.mxu0 %v758_v28 }
 0x272   : > { %774 = vmatpush.msra.mxu0 %v757_v20 }
 0x274   : > { %775 = vmatpush.msra.mxu0 %v756_v29 }
 0x276   : > { %776 = vmatpush.msra.mxu0 %v755_v30 }
 0x278   : > { %777 = vmatpush.msra.mxu0 %v754_v31 }
 0x27a   : > { %778 = vmatpush.msra.mxu0 %v753_v32 }
 0x27c   : > { %779 = vmatpush.msra.mxu0 %v752_v33 }
 0x27e   : > { %780 = vmatpush.msra.mxu0 %v751_v34 }
 0x280   : > { %781 = vmatpush.msra.mxu0 %v750_v35 }
 0x282   : > { %782 = vmatpush.msra.mxu0 %v749_v36 }
 0x284   : > { %783 = vmatpush.msra.mxu0 %v748_v37 }
 0x285   : > { %784 = vmatmul.f32.vlgmr.msra.gmra.mxu0 %v747_v38 }
 0x302   : > { %v785_v42 = vpop.f32.mrf.mxu0 }
 0x303   : > { %v786_v43 = vadd.f32 %v1110_v41, %v785_v42 }
 0x305   : > { %v791_v44 = vsel %vm790_vm0, %v786_v43, -1e+30 }
 0x306   : > { %792 = vmax.xlane.f32.xlu0 %v791_v44 }
 0x379   : > { %v793_v45 = vpop.xlane.xlu0 %792 }
 0x37a   : > { %v794_v46 = vsub.f32 %v791_v44, %v793_v45 }
 0x37c   : > { %v795_v47 = vmul.f32 1.442695, %v794_v46 }
 0x37e   : > { %1111 = vpow2.f32 %v795_v47 }
 0x384   : > { %v1112_v48 = vpop.eup %1111 }
 0x385   : > { %797 = vadd.xlane.f32.xlu0 %v1112_v48 }
 0x3f8   : > { %v798_v49 = vpop.xlane.xlu0 %797 }
 0x3f9   : > { %1113 = vlog2.f32 %v798_v49 }
 0x3ff   : > { %v1114_v50 = vpop.eup %1113 }
 0x400   : > { %v800_v51 = vmul.f32 0.6931472, %v1114_v50 }
 0x402   : > { %v801_v52 = vsub.f32 %v794_v46, %v800_v51 }
 0x404   : > { %802 = vst [vmem:[#allocation14] sm:$0xff] %v801_v52 }
 0x405 PF: > { %p1051_p6 = scmp.eq.s32.totalorder %s1472_s30, 3  ;;  %s811_s1 = sshll.u32 %s1748_s7, 4  ;;  %s812_s1 = int_to_ptr.hbm [resolvable:$true] %s811_s1 }
 0x406   : > { %s1402_s2 = smov [#allocation14]  }
 0x407   : > { %s809_s4 = sshll.u32 %s1402_s2, 4  ;;  %s810_s4 = int_to_ptr.vmem [resolvable:$true] %s809_s4 }
 0x408   : > { %1019 = dma.vmem_to_hbm [thread:$0]  (%p1051_p6), %s810_s4, 128, %s812_s1, [#allocation6]  }
 0x409   : > { %1368 = dma.done.wait (%p1051_p6), [#allocation6], 128  }
 0x40a   : > { %1370 = vsyncadd (%p1051_p6), [#allocation6], 4294967168 }
 0x40b PF: > { %s21_s29 = sadd.s32 1, %s1393_s29   ;;  %s1772_s30 = sld [smem:[#allocation21_spill]] }
 0x40c   : > { %p18_p7 = scmp.ge.s32.totalorder %s21_s29, 6   ;;  %s1773_s24 = smov %s1377_s25 }
 0x40d   : > { %s1774_s25 = smov %s1381_s26  ;;  %s1775_s26 = smov %s1532_s17 }
 0x40e   : > { %s1776_s27 = smov %s1389_s28  ;;  %20 = sbr.rel (!%p18_p7) target bundleno = 11 (0xb), region = 131 }
 0x411   : > { %s1777_s28 = smov %s1772_s30 }
 0x413   :  { %825 = vsyncpa [#allocation5], 1 }
 0x414   :  { %827 = vsyncpa [#allocation5 + $0x1], 1 }
 0x415   :  { %828 = vsyncpa [#allocation8], 1 }
 0x416   :  { %829 = vsyncpa [#allocation13], 1 }
 0x417   :  { %830 = vsyncpa [#allocation6], 1 }
 0x418   :  { %832 = vsyncpa [#allocation6 + $0x1], 1 }

</bundles_post_ra>
